<compile_context>
chip_gen: v7x
topology: tpu7x:2x2x1
jax: 0.10.0
libtpu: 0.0.40
codegen_flags: <defaults>
</compile_context>

<pallas_src>
import functools

import jax
import jax.numpy as jnp
from jax.experimental import pallas as pl
from jax.experimental.pallas import tpu as pltpu


def _round_up(x, m):
    return (x + m - 1) // m * m


def _cdiv(a, b):
    return (a + b - 1) // b


def maxout_kernel(x_ref, w_ref, b_ref, o_ref, *, pool_size, o_tile):
    # x_ref: (bt, Kpad)  w_ref: (Kpad, pool*o_tile)  b_ref: (1, pool*o_tile)  -> (bt, o_tile)
    # One long vmatmul stream (single MXU issue/drain), f32 accumulation.
    acc = jnp.dot(x_ref[...], w_ref[...], preferred_element_type=jnp.float32)
    acc = acc + b_ref[...]                              # bias added once, in f32
    result = acc[:, 0:o_tile]
    for p in range(1, pool_size):                       # static unroll; pool_size is small
        result = jnp.maximum(result, acc[:, p * o_tile:(p + 1) * o_tile])
    o_ref[...] = result.astype(o_ref.dtype)


def prepare_maxout_params(weight, bias, pool_size, *, param_dtype=jnp.float32, o_tile=None):
    """One-time relayout/padding of the PyTorch nn.Linear params (hoisted out of forward).

    weight: (output_dim*pool_size, input_dim), bias: (output_dim*pool_size,)  [PyTorch layout]
    Returns (w_slab, b_slab, o_tile) with
      w_slab[k, ot*pool*o_tile + p*o_tile + ol] = weight[(ot*o_tile + ol)*pool_size + p, k]
      b_slab[0, same column]                   = bias[(ot*o_tile + ol)*pool_size + p]
    so each O-tile's pool pieces are lane-contiguous for the fused matmul + sliced max.
    """
    out_total, K = weight.shape
    O = out_total // pool_size
    assert O * pool_size == out_total
    Kpad = _round_up(K, 128)

    itemsize = jnp.dtype(param_dtype).itemsize
    if o_tile is None:
        # Keep the (double-buffered) weight tile within ~16 MiB so it coexists with the
        # x/out tiles inside v7x's 64 MiB/TC VMEM; if the full padded O fits, n_otiles
        # is 1 and the constant block index keeps the weight resident (no re-DMA).
        budget = 16 * 1024 * 1024
        max_cols = budget // (2 * Kpad * pool_size * itemsize)
        o_tile = min(_round_up(O, 128), max(128, (max_cols // 128) * 128))
    o_tile = int(o_tile)
    Opad = _round_up(O, o_tile)
    n_ot = Opad // o_tile

    w3 = weight.reshape(O, pool_size, K)                        # [o, p, k]
    w3 = jnp.pad(w3, ((0, Opad - O), (0, 0), (0, Kpad - K)))    # (Opad, pool, Kpad)
    w_slab = (
        jnp.transpose(w3.reshape(n_ot, o_tile, pool_size, Kpad), (3, 0, 2, 1))
        .reshape(Kpad, n_ot * pool_size * o_tile)
        .astype(param_dtype)                                    # optionally bf16 operands
    )

    b2 = jnp.pad(bias.reshape(O, pool_size), ((0, Opad - O), (0, 0)))
    b_slab = (
        jnp.transpose(b2.reshape(n_ot, o_tile, pool_size), (0, 2, 1))
        .reshape(1, n_ot * pool_size * o_tile)
        .astype(jnp.float32)                                    # bias-add stays f32
    )
    return w_slab, b_slab, o_tile


@functools.partial(jax.jit, static_argnames=("output_dim", "pool_size", "o_tile", "batch_tile"))
def maxout_forward(x, w_slab, b_slab, *, output_dim, pool_size, o_tile, batch_tile=256):
    """x: (B, input_dim); w_slab/b_slab/o_tile from prepare_maxout_params."""
    B, K = x.shape
    Kpad, total_cols = w_slab.shape
    assert K <= Kpad
    assert total_cols % (pool_size * o_tile) == 0
    n_ot = total_cols // (pool_size * o_tile)
    Opad = n_ot * o_tile
    assert output_dim <= Opad

    compute_dtype = w_slab.dtype
    pack = 16 if compute_dtype == jnp.bfloat16 else 8           # sublane packing

    # Adaptive batch tile: splits B evenly so padding waste is < pack rows per tile
    # (instead of up to batch_tile-1 rows), while targeting ~batch_tile rows per step.
    n_btiles = max(1, _cdiv(B, batch_tile))
    bt = _round_up(_cdiv(B, n_btiles), pack)
    Bp = _round_up(B, bt)

    x_p = jnp.pad(x, ((0, Bp - B), (0, Kpad - K)))
    if x_p.dtype != compute_dtype:
        x_p = x_p.astype(compute_dtype)                         # bf16 matmul operands

    pw = pool_size * o_tile
    grid = (Bp // bt, n_ot)

    # Explicit scoped-VMEM budget: 2 buffers each of x / w / b / out tiles + headroom.
    est = (2 * bt * Kpad * x_p.dtype.itemsize
           + 2 * Kpad * pw * w_slab.dtype.itemsize
           + 2 * 8 * pw * 4
           + 2 * bt * o_tile * 4)
    vmem_limit = int(min(100 * 2 ** 20, max(32 * 2 ** 20, int(est * 1.5))))

    cost = pl.CostEstimate(
        flops=2 * Bp * Kpad * total_cols,
        transcendentals=0,
        bytes_accessed=(x_p.size * x_p.dtype.itemsize
                        + w_slab.size * w_slab.dtype.itemsize
                        + b_slab.size * 4
                        + Bp * Opad * 4),
    )

    out_padded = pl.pallas_call(
        functools.partial(maxout_kernel, pool_size=pool_size, o_tile=o_tile),
        out_shape=jax.ShapeDtypeStruct((Bp, Opad), x.dtype),
        grid_spec=pltpu.PrefetchScalarGridSpec(
            num_scalar_prefetch=0,
            grid=grid,
            in_specs=[
                pl.BlockSpec((bt, Kpad), lambda i, j: (i, 0)),
                # Weight/bias indexed only by the O-tile axis; with n_ot == 1 the block
                # index is constant across the grid -> resident, no re-DMA.
                pl.BlockSpec((Kpad, pw), lambda i, j: (0, j)),
                pl.BlockSpec((1, pw), lambda i, j: (0, j)),
            ],
            out_specs=pl.BlockSpec((bt, o_tile), lambda i, j: (i, j)),
        ),
        compiler_params=pltpu.CompilerParams(
            dimension_semantics=("parallel", "parallel"),
            vmem_limit_bytes=vmem_limit,
        ),
        cost_estimate=cost,
    )(x_p, w_slab, b_slab)

    return out_padded[:B, :output_dim]


def maxout_ref(x, weight, bias, pool_size):
    """Pure-JAX reference mirroring the PyTorch module exactly."""
    B = x.shape[0]
    O = weight.shape[0] // pool_size
    y = x @ weight.T + bias
    return jnp.max(y.reshape(B, O, pool_size), axis=-1)


if __name__ == "__main__":
    key = jax.random.PRNGKey(0)
    input_dim, output_dim, pool_size, batch = 32, 16, 4, 4

    kx, kw, kb = jax.random.split(key, 3)
    bound = 1.0 / (input_dim ** 0.5)
    weight = jax.random.uniform(
        kw, (output_dim * pool_size, input_dim), jnp.float32, -bound, bound)
    bias = jax.random.uniform(
        kb, (output_dim * pool_size,), jnp.float32, -bound, bound)
    x = jax.random.normal(kx, (batch, input_dim), jnp.float32)

    ref = maxout_ref(x, weight, bias, pool_size)

    # Default f32 path: exact parity with the PyTorch module.
    w_slab, b_slab, o_tile = prepare_maxout_params(weight, bias, pool_size)
    out = maxout_forward(x, w_slab, b_slab, output_dim=output_dim,
                         pool_size=pool_size, o_tile=o_tile)
    out = jax.block_until_ready(out)
    assert out.shape == (batch, output_dim), out.shape
    assert jnp.allclose(out, ref, atol=1e-5, rtol=1e-5), (
        float(jnp.max(jnp.abs(out - ref))))

    # Opt-in bf16-operand path (f32 accumulation): ~3x MXU throughput on v6e/v7x,
    # with correspondingly looser tolerance.
    w16, b16, ot16 = prepare_maxout_params(
        weight, bias, pool_size, param_dtype=jnp.bfloat16)
    out16 = jax.block_until_ready(
        maxout_forward(x, w16, b16, output_dim=output_dim,
                       pool_size=pool_size, o_tile=ot16))
    assert out16.shape == (batch, output_dim), out16.shape
    assert jnp.allclose(out16, ref, atol=5e-2, rtol=5e-2), (
        float(jnp.max(jnp.abs(out16 - ref))))

    print("KERNEL_OK")
</pallas_src>

<mosaic_0001>
module attributes {stable_mosaic.version = 11 : i64} {
  func.func @maxout_kernel(%arg0: i32, %arg1: i32, %arg2: memref<8x128xf32, #tpu.memory_space<vmem>>, %arg3: memref<128x512xf32, #tpu.memory_space<vmem>>, %arg4: memref<1x512xf32, #tpu.memory_space<vmem>>, %arg5: memref<8x128xf32, #tpu.memory_space<vmem>>) attributes {dimension_semantics = [#tpu.dimension_semantics<parallel>, #tpu.dimension_semantics<parallel>], iteration_bounds = array<i64: 1, 1>, scalar_prefetch = 0 : i64, scratch_operands = 0 : i64, tpu.core_type = #tpu.core_type<tc>, window_params = [{transform_indices = @transform_0, window_bounds = array<i64: 8, 128>}, {transform_indices = @transform_1, window_bounds = array<i64: 128, 512>}, {transform_indices = @transform_2, window_bounds = array<i64: 1, 512>}, {transform_indices = @transform_3, window_bounds = array<i64: 8, 128>}]} {
    %c0 = arith.constant 0 : index
    %c0_0 = arith.constant 0 : index
    %0 = vector.load %arg2[%c0, %c0_0] : memref<8x128xf32, #tpu.memory_space<vmem>>, vector<8x128xf32>
    %c0_1 = arith.constant 0 : index
    %c0_2 = arith.constant 0 : index
    %1 = vector.load %arg3[%c0_1, %c0_2] : memref<128x512xf32, #tpu.memory_space<vmem>>, vector<128x512xf32>
    %cst = arith.constant dense<0.000000e+00> : vector<8x512xf32>
    %2 = tpu.matmul %0, %1, %cst {dimension_numbers = #tpu.dot_dimension_numbers<[1], [0], [0], [1], [0, 0, 1, 1], [], []>} : vector<8x128xf32>, vector<128x512xf32>, vector<8x512xf32> -> vector<8x512xf32>
    %c0_3 = arith.constant 0 : index
    %c0_4 = arith.constant 0 : index
    %3 = vector.load %arg4[%c0_3, %c0_4] : memref<1x512xf32, #tpu.memory_space<vmem>>, vector<1x512xf32>
    %4 = vector.broadcast %3 : vector<1x512xf32> to vector<8x512xf32>
    %5 = arith.addf %2, %4 : vector<8x512xf32>
    %6 = vector.extract_strided_slice %5 {offsets = [0, 0], sizes = [8, 128], strides = [1, 1]} : vector<8x512xf32> to vector<8x128xf32>
    %7 = vector.extract_strided_slice %5 {offsets = [0, 128], sizes = [8, 128], strides = [1, 1]} : vector<8x512xf32> to vector<8x128xf32>
    %8 = arith.maximumf %6, %7 : vector<8x128xf32>
    %9 = vector.extract_strided_slice %5 {offsets = [0, 256], sizes = [8, 128], strides = [1, 1]} : vector<8x512xf32> to vector<8x128xf32>
    %10 = arith.maximumf %8, %9 : vector<8x128xf32>
    %11 = vector.extract_strided_slice %5 {offsets = [0, 384], sizes = [8, 128], strides = [1, 1]} : vector<8x512xf32> to vector<8x128xf32>
    %12 = arith.maximumf %10, %11 : vector<8x128xf32>
    %c0_5 = arith.constant 0 : index
    %c0_6 = arith.constant 0 : index
    %13 = vector.load %arg5[%c0_5, %c0_6] : memref<8x128xf32, #tpu.memory_space<vmem>>, vector<8x128xf32>
    tpu.vector_store %arg5[%c0_5, %c0_6], %12 {strides = array<i32>} : memref<8x128xf32, #tpu.memory_space<vmem>>, vector<8x128xf32>,
    return
  }
  func.func @transform_0(%arg0: i32, %arg1: i32) -> (i32, i32) {
    %c0_i32 = arith.constant 0 : i32
    %c0_i32_0 = arith.constant 0 : i32
    return %arg0, %c0_i32 : i32, i32
  }
  func.func @transform_1(%arg0: i32, %arg1: i32) -> (i32, i32) {
    %c0_i32 = arith.constant 0 : i32
    %c0_i32_0 = arith.constant 0 : i32
    return %c0_i32, %arg1 : i32, i32
  }
  func.func @transform_2(%arg0: i32, %arg1: i32) -> (i32, i32) {
    %c0_i32 = arith.constant 0 : i32
    %c0_i32_0 = arith.constant 0 : i32
    return %c0_i32, %arg1 : i32, i32
  }
  func.func @transform_3(%arg0: i32, %arg1: i32) -> (i32, i32) {
    %c0_i32 = arith.constant 0 : i32
    return %arg0, %arg1 : i32, i32
  }
}

</mosaic_0001>

<bundles_post_ra>
// kernel: maxout_forward.1
= control target key start
LH: loop header
LB: loop body
LE: loop exit
PB: predicated region body
PF: predicated region fallthrough
CT: control target
= control target key end

     0   :  { %8 = vsyncpa [#allocation3], 0  ;;  %s358_s12 = smov [#allocation2]   ;;  %s403_s0 = inlined_call_operand.vmem [shape: f32[8,128], index: 0, kind: input, shape index: {}]   ;;  %s404_s1 = inlined_call_operand.hbm [shape: f32[128,512], index: 1, kind: input, shape index: {}]   ;;  %s405_s2 = inlined_call_operand.vmem [shape: f32[1,512], index: 2, kind: input, shape index: {}]   ;;  %s406_s3 = inlined_call_operand.vmem [shape: f32[8,128], index: 3, kind: output, shape index: {}]  }
   0x1   :  { %s16_s13 = sshll.u32 %s358_s12, 4  ;;  %s334_s16 = scalar_lea.hbm %s404_s1, 8192  ;;  %s17_s13 = int_to_ptr.vmem [resolvable:$true] %s16_s13 }
   0x2   :  { %p335_p0 = scmp.ne.s32.totalorder %s404_s1, %s334_s16  ;;  %p338_p1 = scmp.lt.u32.totalorder %s334_s16, %s404_s1 }
   0x4   :  { %p340_p2 = pnand %p338_p1, %p335_p0 }
   0x6   :  { %343 = shalt.err (!%p340_p2)
}
   0x7   :  { %s344_s21 = scalar_lea.vmem %s17_s13, 8192  ;;  %p349_p4 = scmp.lt.s32.totalorder %s17_s13, %s17_s13 }
   0x8   :  { %p345_p3 = scmp.ne.s32.totalorder %s17_s13, %s344_s21  ;;  %p350_p5 = scmp.lt.s32.totalorder %s344_s21, %s344_s21 }
   0xa   :  { %p351_p6 = por %p350_p5, %p349_p4 }
   0xc   :  { %p352_p7 = pnand %p351_p6, %p345_p3 }
   0xe   :  { %355 = shalt.err (!%p352_p7)
}
   0xf   :  { %s359_s22 = smov 512   ;;  %s360_s23 = smov 32  }
  0x10   :  { %22 = dma.hbm_to_vmem [thread:$0]  %s404_s1, 8192, %s17_s13, [#allocation3], %s359_s22, %s359_s22, %s360_s23  }
  0x11   :  { %356 = dma.done.wait [#allocation3], 8192  }
  0x12   :  { %357 = vsyncadd [#allocation3], 4294959104  ;;  %v361_v0 = vmov 0.0   ;;  %v30_v1 = vld [vmem:[#allocation2 + $0x8] sm:$0xff]  ;;  %v29_v3 = vld [vmem:[#allocation2] sm:$0xff] }
  0x13   :  { %179 = vmatprep.mubr.f32.mxu0 %v361_v0  ;;  %250 = vmatprep.mubr.f32.mxu1 %v361_v0  ;;  %v34_v2 = vld [vmem:[#allocation2 + $0x28] sm:$0xff]  ;;  %v33_v5 = vld [vmem:[#allocation2 + $0x20] sm:$0xff]  ;;  %v32_v6 = vld [vmem:[#allocation2 + $0x18] sm:$0xff] }
  0x14   :  { %v266_v4 = vpack.c.bf16 %v34_v2, %v30_v1  ;;  %v36_v7 = vld [vmem:[#allocation2 + $0x38] sm:$0xff]  ;;  %v268_v8 = vpack.c.bf16 %v33_v5, %v29_v3  ;;  %v31_v10 = vld [vmem:[#allocation2 + $0x10] sm:$0xff]  ;;  %v38_v12 = vld [vmem:[#allocation2 + $0x48] sm:$0xff] }
  0x15   :  { %v298_v9 = vpack.c.bf16 %v36_v7, %v32_v6  ;;  %v35_v11 = vld [vmem:[#allocation2 + $0x30] sm:$0xff]  ;;  %v42_v14 = vld [vmem:[#allocation2 + $0x68] sm:$0xff]  ;;  %v37_v15 = vld [vmem:[#allocation2 + $0x40] sm:$0xff] }
  0x16   :  { %267 = vmatprep.subr.bf16.mxu0 %v266_v4  ;;  %v300_v13 = vpack.c.bf16 %v35_v11, %v31_v10  ;;  %v41_v16 = vld [vmem:[#allocation2 + $0x60] sm:$0xff]  ;;  %v270_v17 = vpack.c.bf16 %v42_v14, %v38_v12  ;;  %v40_v19 = vld [vmem:[#allocation2 + $0x58] sm:$0xff]  ;;  %v39_v21 = vld [vmem:[#allocation2 + $0x50] sm:$0xff] }
  0x17   :  { %269 = vmatpush1.bf16.msra.mxu0 %v268_v8  ;;  %299 = vmatprep.subr.bf16.mxu1 %v298_v9  ;;  %v272_v18 = vpack.c.bf16 %v41_v16, %v37_v15  ;;  %v44_v20 = vld [vmem:[#allocation2 + $0x78] sm:$0xff]  ;;  %v43_v23 = vld [vmem:[#allocation2 + $0x70] sm:$0xff]  ;;  %v46_v24 = vld [vmem:[#allocation2 + $0x88] sm:$0xff] }
  0x18   :  { %301 = vmatpush1.bf16.msra.mxu1 %v300_v13  ;;  %v302_v22 = vpack.c.bf16 %v44_v20, %v40_v19  ;;  %v50_v25 = vld [vmem:[#allocation2 + $0xa8] sm:$0xff]  ;;  %271 = vmatprep.subr.bf16.mxu0 %v270_v17  ;;  %v304_v26 = vpack.c.bf16 %v43_v23, %v39_v21  ;;  %v45_v28 = vld [vmem:[#allocation2 + $0x80] sm:$0xff]  ;;  %v48_v30 = vld [vmem:[#allocation2 + $0x98] sm:$0xff] }
  0x19   :  { %v274_v27 = vpack.c.bf16 %v50_v25, %v46_v24  ;;  %v49_v29 = vld [vmem:[#allocation2 + $0xa0] sm:$0xff]  ;;  %v52_v31 = vld [vmem:[#allocation2 + $0xb8] sm:$0xff]  ;;  %v47_v32 = vld [vmem:[#allocation2 + $0x90] sm:$0xff] }
  0x1a   :  { %303 = vmatprep.subr.bf16.mxu1 %v302_v22  ;;  %v51_v33 = vld [vmem:[#allocation2 + $0xb0] sm:$0xff]  ;;  %v276_v34 = vpack.c.bf16 %v49_v29, %v45_v28  ;;  %v306_v35 = vpack.c.bf16 %v52_v31, %v48_v30  ;;  %v54_v36 = vld [vmem:[#allocation2 + $0xc8] sm:$0xff]  ;;  %v53_v38 = vld [vmem:[#allocation2 + $0xc0] sm:$0xff] }
  0x1b   :  { %273 = vmatpush1.bf16.msra.mxu0 %v272_v18  ;;  %v58_v37 = vld [vmem:[#allocation2 + $0xe8] sm:$0xff]  ;;  %v308_v39 = vpack.c.bf16 %v51_v33, %v47_v32  ;;  %v57_v41 = vld [vmem:[#allocation2 + $0xe0] sm:$0xff]  ;;  %v56_v42 = vld [vmem:[#allocation2 + $0xd8] sm:$0xff] }
  0x1c   :  { %305 = vmatpush1.bf16.msra.mxu1 %v304_v26  ;;  %275 = vmatprep.subr.bf16.mxu0 %v274_v27  ;;  %v278_v40 = vpack.c.bf16 %v58_v37, %v54_v36  ;;  %v60_v43 = vld [vmem:[#allocation2 + $0xf8] sm:$0xff]  ;;  %v55_v45 = vld [vmem:[#allocation2 + $0xd0] sm:$0xff]  ;;  %v62_v47 = vld [vmem:[#allocation2 + $0x108] sm:$0xff]  ;;  %v280_v49 = vpack.c.bf16 %v57_v41, %v53_v38 }
  0x1d   :  { %307 = vmatprep.subr.bf16.mxu1 %v306_v35  ;;  %v310_v44 = vpack.c.bf16 %v60_v43, %v56_v42  ;;  %v59_v46 = vld [vmem:[#allocation2 + $0xf0] sm:$0xff]  ;;  %v66_v48 = vld [vmem:[#allocation2 + $0x128] sm:$0xff]  ;;  %v64_v50 = vld [vmem:[#allocation2 + $0x118] sm:$0xff] }
  0x1e   :  { %v68_v51 = vld [vmem:[#allocation2 + $0x138] sm:$0xff]  ;;  %v312_v52 = vpack.c.bf16 %v59_v46, %v55_v45  ;;  %v282_v53 = vpack.c.bf16 %v66_v48, %v62_v47  ;;  %v61_v54 = vld [vmem:[#allocation2 + $0x100] sm:$0xff]  ;;  %v63_v56 = vld [vmem:[#allocation2 + $0x110] sm:$0xff] }
  0x1f   :  { %277 = vmatpush1.bf16.msra.mxu0 %v276_v34  ;;  %v65_v55 = vld [vmem:[#allocation2 + $0x120] sm:$0xff]  ;;  %v314_v57 = vpack.c.bf16 %v68_v51, %v64_v50  ;;  %v67_v58 = vld [vmem:[#allocation2 + $0x130] sm:$0xff]  ;;  %v70_v59 = vld [vmem:[#allocation2 + $0x148] sm:$0xff]  ;;  %v95_v34 = vlaneseq }
  0x20   :  { %309 = vmatpush1.bf16.msra.mxu1 %v308_v39  ;;  %279 = vmatprep.subr.bf16.mxu0 %v278_v40  ;;  %v74_v60 = vld [vmem:[#allocation2 + $0x168] sm:$0xff]  ;;  %v72_v61 = vld [vmem:[#allocation2 + $0x158] sm:$0xff]  ;;  %v284_v63 = vpack.c.bf16 %v65_v55, %v61_v54  ;;  %v316_v0 = vpack.c.bf16 %v67_v58, %v63_v56  ;;  %v69_v2 = vld [vmem:[#allocation2 + $0x140] sm:$0xff] }
  0x21   :  { %311 = vmatprep.subr.bf16.mxu1 %v310_v44  ;;  %v76_v62 = vld [vmem:[#allocation2 + $0x178] sm:$0xff]  ;;  %v286_v1 = vpack.c.bf16 %v74_v60, %v70_v59  ;;  %v73_v3 = vld [vmem:[#allocation2 + $0x160] sm:$0xff]  ;;  %v71_v4 = vld [vmem:[#allocation2 + $0x150] sm:$0xff]  ;;  %v96_v35 = vshrl.u32 %v95_v34, 7 }
  0x22   :  { %v318_v5 = vpack.c.bf16 %v76_v62, %v72_v61  ;;  %v75_v6 = vld [vmem:[#allocation2 + $0x170] sm:$0xff]  ;;  %v78_v7 = vld [vmem:[#allocation2 + $0x188] sm:$0xff]  ;;  %v80_v9 = vld [vmem:[#allocation2 + $0x198] sm:$0xff]  ;;  %v288_v11 = vpack.c.bf16 %v73_v3, %v69_v2 }
  0x23   :  { %281 = vmatpush1.bf16.msra.mxu0 %v280_v49  ;;  %v82_v8 = vld [vmem:[#allocation2 + $0x1a8] sm:$0xff]  ;;  %v84_v10 = vld [vmem:[#allocation2 + $0x1b8] sm:$0xff]  ;;  %v320_v12 = vpack.c.bf16 %v75_v6, %v71_v4  ;;  %v77_v14 = vld [vmem:[#allocation2 + $0x180] sm:$0xff]  ;;  %v97_v36 = vsub.s32 0, %v96_v35  ;;  %v101_v38 = vsub.s32 1, %v96_v35  ;;  %v105_v39 = vsub.s32 2, %v96_v35 }
  0x24   :  { %313 = vmatpush1.bf16.msra.mxu1 %v312_v52  ;;  %283 = vmatprep.subr.bf16.mxu0 %v282_v53  ;;  %v290_v13 = vpack.c.bf16 %v82_v8, %v78_v7  ;;  %v81_v15 = vld [vmem:[#allocation2 + $0x1a0] sm:$0xff]  ;;  %v79_v16 = vld [vmem:[#allocation2 + $0x190] sm:$0xff]  ;;  %v322_v17 = vpack.c.bf16 %v84_v10, %v80_v9  ;;  %v86_v19 = vld [vmem:[#allocation2 + $0x1c8] sm:$0xff]  ;;  %v109_v43 = vsub.s32 3, %v96_v35 }
  0x25   :  { %315 = vmatprep.subr.bf16.mxu1 %v314_v57  ;;  %v83_v18 = vld [vmem:[#allocation2 + $0x1b0] sm:$0xff]  ;;  %v90_v20 = vld [vmem:[#allocation2 + $0x1e8] sm:$0xff]  ;;  %v88_v21 = vld [vmem:[#allocation2 + $0x1d8] sm:$0xff]  ;;  %v292_v23 = vpack.c.bf16 %v81_v15, %v77_v14 }
  0x26   :  { %v92_v22 = vld [vmem:[#allocation2 + $0x1f8] sm:$0xff]  ;;  %v324_v24 = vpack.c.bf16 %v83_v18, %v79_v16  ;;  %v294_v25 = vpack.c.bf16 %v90_v20, %v86_v19  ;;  %v85_v26 = vld [vmem:[#allocation2 + $0x1c0] sm:$0xff]  ;;  %v87_v29 = vld [vmem:[#allocation2 + $0x1d0] sm:$0xff] }
  0x27   :  { %285 = vmatpush1.bf16.msra.mxu0 %v284_v63  ;;  %v89_v27 = vld [vmem:[#allocation2 + $0x1e0] sm:$0xff]  ;;  %v326_v28 = vpack.c.bf16 %v92_v22, %v88_v21  ;;  %v91_v30 = vld [vmem:[#allocation2 + $0x1f0] sm:$0xff] }
  0x28   :  { %317 = vmatpush1.bf16.msra.mxu1 %v316_v0  ;;  %287 = vmatprep.subr.bf16.mxu0 %v286_v1  ;;  %v296_v31 = vpack.c.bf16 %v89_v27, %v85_v26  ;;  %v328_v32 = vpack.c.bf16 %v91_v30, %v87_v29  ;;  %v28_v33 = vld [vmem:[%s403_s0] sm:$0xff] }
  0x29   :  { %319 = vmatprep.subr.bf16.mxu1 %v318_v5  ;;  %v93_v37 = vld [vmem:[%s405_s2] sm:$0xf] }
  0x2a   :  { %v98_v40 = vrot.slane %v93_v37, %v97_v36  ;;  %v102_v41 = vrot.slane %v93_v37, %v101_v38  ;;  %v106_v42 = vrot.slane %v93_v37, %v105_v39  ;;  %v110_v50 = vrot.slane %v93_v37, %v109_v43 }
  0x2b   :  { %289 = vmatpush1.bf16.msra.mxu0 %v288_v11 }
  0x2c   :  { %321 = vmatpush1.bf16.msra.mxu1 %v320_v12  ;;  %291 = vmatprep.subr.bf16.mxu0 %v290_v13 }
  0x2d   :  { %323 = vmatprep.subr.bf16.mxu1 %v322_v17 }
  0x2f   :  { %293 = vmatpush1.bf16.msra.mxu0 %v292_v23 }
  0x30   :  { %325 = vmatpush1.bf16.msra.mxu1 %v324_v24  ;;  %295 = vmatprep.subr.bf16.mxu0 %v294_v25 }
  0x31   :  { %327 = vmatprep.subr.bf16.mxu1 %v326_v28 }
  0x33   :  { %297 = vmatpush1.bf16.msra.mxu0 %v296_v31 }
  0x34   :  { %329 = vmatpush1.bf16.msra.mxu1 %v328_v32 }
  0x36   :  { %180 = vmatmul.mubr.f32.vlgmr.msra.gmra.mrb[0].mxu0 %v28_v33 }
  0x37   :  { %251 = vmatmul.mubr.f32.vlgmr.msra.gmra.mrb[0].mxu1 %v28_v33 }
 0x109   :  { %v181_v44 = vpop.f32.mrb[0].mxu0 }
 0x10a   :  { %v182_v45 = vadd.f32 %v181_v44, %v98_v40  ;;  %v183_v46 = vpop.f32.mrb[1].mxu0  ;;  %v252_v47 = vpop.f32.mrb[0].mxu1 }
 0x10b   :  { %v184_v48 = vadd.f32 %v183_v46, %v102_v41  ;;  %v253_v49 = vadd.f32 %v252_v47, %v106_v42  ;;  %v254_v51 = vpop.f32.mrb[1].mxu1 }
 0x10c   :  { %v255_v54 = vadd.f32 %v254_v51, %v110_v50 }
 0x10d   :  { %v257_v52 = vmax.f32 %v182_v45, %v184_v48 }
 0x10f   :  { %v258_v53 = vmax.f32 %v257_v52, %v253_v49 }
 0x111   :  { %v259_v55 = vmax.f32 %v258_v53, %v255_v54 }
 0x113   :  { %260 = vst [vmem:[%s406_s3] sm:$0xff] %v259_v55 }
 0x114   :  { %265 = vsyncpa [#allocation3], 1 }

</bundles_post_ra>
